<compile_context>
chip_gen: v7x
topology: tpu7x:2x2x1
jax: 0.10.0
libtpu: 0.0.40
codegen_flags: <defaults>
</compile_context>

<pallas_src>
import functools

import jax
import jax.numpy as jnp
import numpy as np
from jax import lax
from jax.experimental import pallas as pl
from jax.experimental.pallas import tpu as pltpu

NEG_INF = -1e30  # large finite negative: avoids -inf - (-inf) -> NaN edge cases


def _round_up(x, m):
    return ((x + m - 1) // m) * m


def _pick_tile(full, target):
    """Largest tile <= target (halving from target) that divides `full`."""
    if full <= target:
        return full
    t = target
    while full % t:
        t //= 2
    return max(t, 1)


# ---------------------------------------------------------------------------
# One-time parameter preparation (hoisted out of the forward pass).
# ---------------------------------------------------------------------------
def prepare_qkv_params(wq, bq, wk, bk, wv, bv, *, num_heads):
    """Fuse [Wq|Wk|Wv] -> [H, 3H] and fold 1/sqrt(d) into the Q columns (exact)."""
    H = wq.shape[1]
    d = H // num_heads
    scale = float(1.0 / np.sqrt(d))
    w_qkv = jnp.concatenate([wq.T * scale, wk.T, wv.T], axis=1)      # [H, 3H]
    b_qkv = jnp.concatenate([bq * scale, bk, bv])[None, :]           # [1, 3H]
    return w_qkv, b_qkv


# ---------------------------------------------------------------------------
# Stage 1: fused QKV projection, tiled matmul with f32 accumulator.
# Output is scattered directly into the per-(qkv, head) layout [3*nh, M, d]
# by the out BlockSpec -- no HBM transpose pass afterwards.
# ---------------------------------------------------------------------------
def _qkv_proj_kernel(x_ref, w_ref, b_ref, o_ref, acc_ref, *, nk_steps,
                     heads_per_tile, d):
    kk = pl.program_id(2)

    @pl.when(kk == 0)
    def _():
        acc_ref[...] = jnp.zeros_like(acc_ref)

    acc_ref[...] += jnp.dot(x_ref[...], w_ref[...],
                            preferred_element_type=jnp.float32)

    @pl.when(kk == nk_steps - 1)
    def _():
        res = (acc_ref[...] + b_ref[...]).astype(o_ref.dtype)        # [tm, g*d]
        # Static lane slices split the tile per head; the output DMA then lands
        # each head's [tm, d] slab exactly where the attention stage reads it.
        for g in range(heads_per_tile):
            o_ref[g] = res[:, g * d:(g + 1) * d]


def _qkv_projection_per_head(x2d, w_qkv, b_qkv, *, head_dim, tm, tn, tk):
    M, H = x2d.shape
    N = w_qkv.shape[1]                       # 3H
    heads_per_tile = tn // head_dim
    nh3 = N // head_dim                      # 3 * num_heads
    nk_steps = H // tk
    kernel = functools.partial(_qkv_proj_kernel, nk_steps=nk_steps,
                               heads_per_tile=heads_per_tile, d=head_dim)
    return pl.pallas_call(
        kernel,
        out_shape=jax.ShapeDtypeStruct((nh3, M, head_dim), x2d.dtype),
        grid_spec=pltpu.PrefetchScalarGridSpec(
            num_scalar_prefetch=0,
            grid=(M // tm, N // tn, nk_steps),
            in_specs=[
                pl.BlockSpec((tm, tk), lambda i, j, kk: (i, kk)),    # x tile
                pl.BlockSpec((tk, tn), lambda i, j, kk: (kk, j)),    # fused W tile
                pl.BlockSpec((1, tn), lambda i, j, kk: (0, j)),      # fused bias tile
            ],
            out_specs=pl.BlockSpec((heads_per_tile, tm, head_dim),
                                   lambda i, j, kk: (j, i, 0)),
            scratch_shapes=[pltpu.VMEM((tm, tn), jnp.float32)],
        ),
        compiler_params=pltpu.CompilerParams(
            dimension_semantics=("parallel", "parallel", "arbitrary")),
    )(x2d, w_qkv, b_qkv)


# ---------------------------------------------------------------------------
# Stage 2: causal flash attention over a triangular (scalar-prefetched) grid.
# ---------------------------------------------------------------------------
def _flash_kernel(qi_map_ref, ki_map_ref, q_ref, k_ref, v_ref, o_ref,
                  m_ref, l_ref, acc_ref):
    step = pl.program_id(1)
    qi = qi_map_ref[step]
    ki = ki_map_ref[step]

    @pl.when(ki == 0)
    def _():
        m_ref[...] = jnp.full_like(m_ref, NEG_INF)
        l_ref[...] = jnp.zeros_like(l_ref)
        acc_ref[...] = jnp.zeros_like(acc_ref)

    q = q_ref[0]                                              # [t, d] (scale pre-folded)
    k = k_ref[0]                                              # [t, d]
    # Contract the last dims directly: no explicit transpose.
    scores = lax.dot_general(q, k, (((1,), (1,)), ((), ())),
                             preferred_element_type=jnp.float32)     # [t, t] f32

    def online_update(s):
        m_prev = m_ref[...]
        m_new = jnp.maximum(m_prev, jnp.max(s, axis=-1, keepdims=True))
        alpha = jnp.exp(m_prev - m_new)
        p = jnp.exp(s - m_new)                                # f32 softmax math
        l_ref[...] = alpha * l_ref[...] + jnp.sum(p, axis=-1, keepdims=True)
        acc_ref[...] = alpha * acc_ref[...] + jnp.dot(
            p.astype(v_ref.dtype), v_ref[0],
            preferred_element_type=jnp.float32)
        m_ref[...] = m_new

    # Interior (strictly below-diagonal) tiles: no mask work at all.
    @pl.when(ki < qi)
    def _():
        online_update(scores)

    # Diagonal tile: mask, update, and finalize (it is always the last ki for qi).
    @pl.when(ki == qi)
    def _():
        r = lax.broadcasted_iota(jnp.int32, scores.shape, 0)
        c = lax.broadcasted_iota(jnp.int32, scores.shape, 1)
        online_update(jnp.where(c <= r, scores, NEG_INF))
        # Exact divide: once per q tile, keeps parity with the PyTorch reference.
        o_ref[0] = (acc_ref[...] / l_ref[...]).astype(o_ref.dtype)


def _flash_attention_causal(qkvh, *, batch, num_heads, seq_pad, head_dim,
                            t_seq, out_dtype):
    nt = seq_pad // t_seq
    # Triangular step map: for each qi, visit ki = 0..qi (ascending -- required
    # for the NEG_INF online-softmax init to stay finite).
    qi_steps = np.concatenate(
        [np.full(qi + 1, qi, dtype=np.int32) for qi in range(nt)])
    ki_steps = np.concatenate(
        [np.arange(qi + 1, dtype=np.int32) for qi in range(nt)])
    n_steps = int(qi_steps.shape[0])
    qi_steps = jnp.asarray(qi_steps)
    ki_steps = jnp.asarray(ki_steps)

    nh = num_heads
    bh = batch * nh

    def q_map(b_h, s, qi_m, ki_m):
        return (b_h % nh, (b_h // nh) * nt + qi_m[s], 0)

    def k_map(b_h, s, qi_m, ki_m):
        return (nh + b_h % nh, (b_h // nh) * nt + ki_m[s], 0)

    def v_map(b_h, s, qi_m, ki_m):
        return (2 * nh + b_h % nh, (b_h // nh) * nt + ki_m[s], 0)

    direct_out = (head_dim % 128 == 0)
    if direct_out:
        # Lane-aligned heads: write straight into the final (B, T_pad, H) layout.
        out_shape = jax.ShapeDtypeStruct((batch, seq_pad, nh * head_dim), out_dtype)

        def o_map(b_h, s, qi_m, ki_m):
            return (b_h // nh, qi_m[s], b_h % nh)
    else:
        # d < 128: keep per-head output; one small merge remains in JAX.
        out_shape = jax.ShapeDtypeStruct((bh, seq_pad, head_dim), out_dtype)

        def o_map(b_h, s, qi_m, ki_m):
            return (b_h, qi_m[s], 0)

    out = pl.pallas_call(
        _flash_kernel,
        out_shape=out_shape,
        grid_spec=pltpu.PrefetchScalarGridSpec(
            num_scalar_prefetch=2,
            grid=(bh, n_steps),
            in_specs=[
                pl.BlockSpec((1, t_seq, head_dim), q_map),
                pl.BlockSpec((1, t_seq, head_dim), k_map),
                pl.BlockSpec((1, t_seq, head_dim), v_map),
            ],
            out_specs=pl.BlockSpec((1, t_seq, head_dim), o_map),
            scratch_shapes=[
                pltpu.VMEM((t_seq, 1), jnp.float32),          # m: running max
                pltpu.VMEM((t_seq, 1), jnp.float32),          # l: running denominator
                pltpu.VMEM((t_seq, head_dim), jnp.float32),   # acc: unnormalized out
            ],
        ),
        compiler_params=pltpu.CompilerParams(
            dimension_semantics=("parallel", "arbitrary")),   # BH axis -> megacore
    )(qi_steps, ki_steps, qkvh, qkvh, qkvh)
    return out, direct_out


# ---------------------------------------------------------------------------
# Wrapper == CausalSelfAttention.forward (eval mode: dropout = identity).
# ---------------------------------------------------------------------------
def causal_self_attention(x, w_qkv, b_qkv, *, num_heads, attention_mask=None,
                          seq_tile=512, proj_m_tile=512, proj_n_lanes=512,
                          proj_k_tile=512):
    """x: [B, T, H]; (w_qkv, b_qkv) from prepare_qkv_params. Returns [B, T, H].

    `attention_mask` is accepted for interface parity but NOT applied -- the
    reference attention() only uses the causal (tril) mask.
    """
    del attention_mask
    B, T, H = x.shape
    assert H % num_heads == 0
    d = H // num_heads
    dtype = x.dtype

    # --- sequence tiling + padding (pad instead of shrinking tiles) ----------
    sub = 16 if dtype == jnp.bfloat16 else 8
    t_seq = _round_up(min(seq_tile, _round_up(T, sub)), sub)
    seq_pad = _round_up(T, t_seq)
    if seq_pad != T:
        # Padded key rows are never attended (causal mask uses absolute indices,
        # pad rows come after every real row); padded query rows are sliced off.
        x = jnp.pad(x, ((0, 0), (0, seq_pad - T), (0, 0)))
    M = B * seq_pad

    # --- stage-1 tiles --------------------------------------------------------
    tm = _pick_tile(M, proj_m_tile)
    tk = _pick_tile(H, proj_k_tile)
    if tk % 128 != 0 and tk != H:            # x-block last dim must be 128-mult or full
        tk = H
    nh3 = 3 * num_heads
    g = max(1, min(nh3, proj_n_lanes // d))  # whole heads per N tile
    while nh3 % g:
        g -= 1
    if (g * d) % 128 != 0 and g != nh3:      # keep the lane tile 128-aligned or full
        g = nh3
    tn = g * d

    # --- stage 1: fused QKV projection, scattered into per-head layout -------
    qkvh = _qkv_projection_per_head(x.reshape(M, H), w_qkv, b_qkv,
                                    head_dim=d, tm=tm, tn=tn, tk=tk)

    # --- stage 2: causal flash attention (triangular grid) -------------------
    out, direct = _flash_attention_causal(qkvh, batch=B, num_heads=num_heads,
                                          seq_pad=seq_pad, head_dim=d,
                                          t_seq=t_seq, out_dtype=dtype)
    if direct:
        return out[:, :T, :]
    # d < 128: single head-merge (the only remaining copy outside the kernels).
    out = out.reshape(B, num_heads, seq_pad, d)[:, :, :T, :]
    return out.transpose(0, 2, 1, 3).reshape(B, T, H)


def reference_attention(x, wq, bq, wk, bk, wv, bv, num_heads):
    """Pure-JAX replica of the PyTorch forward, for verification."""
    B, T, H = x.shape
    d = H // num_heads
    scale = 1.0 / np.sqrt(d)
    hi = lax.Precision.HIGHEST

    def proj(w, b):
        p = jnp.dot(x, w.T, precision=hi) + b
        return p.reshape(B, T, num_heads, d).transpose(0, 2, 1, 3)   # [B, h, T, d]

    q, k, v = proj(wq, bq), proj(wk, bk), proj(wv, bv)
    s = jnp.einsum('bhqd,bhkd->bhqk', q, k, precision=hi) * scale
    mask = jnp.tril(jnp.ones((T, T)))[None, None]
    s = jnp.where(mask == 0, -jnp.inf, s)
    p = jax.nn.softmax(s, axis=-1)
    o = jnp.einsum('bhqk,bhkd->bhqd', p, v, precision=hi)
    return o.transpose(0, 2, 1, 3).reshape(B, T, H)


def _run_case(B, T, H, NH, seed, **kwargs):
    key = jax.random.PRNGKey(seed)
    kx, kq, kk_, kv_, kbq, kbk, kbv = jax.random.split(key, 7)
    x = jax.random.normal(kx, (B, T, H), dtype=jnp.float32)
    attention_mask = jnp.ones((B, 1, 1, T), dtype=jnp.float32)  # interface parity only
    wq = 0.02 * jax.random.normal(kq, (H, H), dtype=jnp.float32)
    wk = 0.02 * jax.random.normal(kk_, (H, H), dtype=jnp.float32)
    wv = 0.02 * jax.random.normal(kv_, (H, H), dtype=jnp.float32)
    bq = 0.02 * jax.random.normal(kbq, (H,), dtype=jnp.float32)
    bk = 0.02 * jax.random.normal(kbk, (H,), dtype=jnp.float32)
    bv = 0.02 * jax.random.normal(kbv, (H,), dtype=jnp.float32)

    w_qkv, b_qkv = prepare_qkv_params(wq, bq, wk, bk, wv, bv, num_heads=NH)
    out = causal_self_attention(x, w_qkv, b_qkv, num_heads=NH,
                                attention_mask=attention_mask, **kwargs)
    out = jax.block_until_ready(out)

    ref = reference_attention(x, wq, bq, wk, bk, wv, bv, NH)
    np.testing.assert_allclose(np.asarray(out), np.asarray(ref),
                               rtol=5e-3, atol=5e-4)


if __name__ == "__main__":
    # Primary small case (matches the module's intended shapes).
    _run_case(B=2, T=8, H=32, NH=4, seed=0)
    # Coverage: triangular multi-tile grid, sequence padding (56 -> 64), K-step
    # accumulation, multi M/N projection tiles, head group straddling Q/K columns.
    _run_case(B=2, T=56, H=256, NH=4, seed=1,
              seq_tile=16, proj_m_tile=64, proj_k_tile=128)
    # Coverage: d == 128 -> direct lane-aligned write into the (B, T, H) output.
    _run_case(B=2, T=24, H=512, NH=4, seed=2, seq_tile=8)

    print("KERNEL_OK")
</pallas_src>

<mosaic_0001>
module attributes {stable_mosaic.version = 11 : i64} {
  func.func @_qkv_proj_kernel(%arg0: i32, %arg1: i32, %arg2: i32, %arg3: memref<16x32xf32, #tpu.memory_space<vmem>>, %arg4: memref<32x96xf32, #tpu.memory_space<vmem>>, %arg5: memref<1x96xf32, #tpu.memory_space<vmem>>, %arg6: memref<12x16x8xf32, #tpu.memory_space<vmem>>, %arg7: memref<16x96xf32, #tpu.memory_space<vmem>>) attributes {dimension_semantics = [#tpu.dimension_semantics<parallel>, #tpu.dimension_semantics<parallel>, #tpu.dimension_semantics<arbitrary>], iteration_bounds = array<i64: 1, 1, 1>, scalar_prefetch = 0 : i64, scratch_operands = 1 : i64, tpu.core_type = #tpu.core_type<tc>, window_params = [{transform_indices = @transform_0, window_bounds = array<i64: 16, 32>}, {transform_indices = @transform_1, window_bounds = array<i64: 32, 96>}, {transform_indices = @transform_2, window_bounds = array<i64: 1, 96>}, {transform_indices = @transform_3, window_bounds = array<i64: 12, 16, 8>}]} {
    %c0_i32 = arith.constant 0 : i32
    %0 = arith.cmpi eq, %arg2, %c0_i32 : i32
    %1 = arith.extui %0 : i1 to i32
    %c0_i32_0 = arith.constant 0 : i32
    %2 = arith.cmpi ne, %1, %c0_i32_0 : i32
    scf.if %2 {
      %cst_10 = arith.constant 0.000000e+00 : f32
      %12 = vector.broadcast %cst_10 : f32 to vector<16x96xf32>
      %c0_11 = arith.constant 0 : index
      %c0_12 = arith.constant 0 : index
      %13 = vector.load %arg7[%c0_11, %c0_12] : memref<16x96xf32, #tpu.memory_space<vmem>>, vector<16x96xf32>
      tpu.vector_store %arg7[%c0_11, %c0_12], %12 {strides = array<i32>} : memref<16x96xf32, #tpu.memory_space<vmem>>, vector<16x96xf32>,
    } else {
    }
    %c0 = arith.constant 0 : index
    %c0_1 = arith.constant 0 : index
    %3 = vector.load %arg7[%c0, %c0_1] : memref<16x96xf32, #tpu.memory_space<vmem>>, vector<16x96xf32>
    %c0_2 = arith.constant 0 : index
    %c0_3 = arith.constant 0 : index
    %4 = vector.load %arg3[%c0_2, %c0_3] : memref<16x32xf32, #tpu.memory_space<vmem>>, vector<16x32xf32>
    %c0_4 = arith.constant 0 : index
    %c0_5 = arith.constant 0 : index
    %5 = vector.load %arg4[%c0_4, %c0_5] : memref<32x96xf32, #tpu.memory_space<vmem>>, vector<32x96xf32>
    %cst = arith.constant dense<0.000000e+00> : vector<16x96xf32>
    %6 = tpu.matmul %4, %5, %cst {dimension_numbers = #tpu.dot_dimension_numbers<[1], [0], [0], [1], [0, 0, 1, 1], [], []>} : vector<16x32xf32>, vector<32x96xf32>, vector<16x96xf32> -> vector<16x96xf32>
    %7 = arith.addf %3, %6 : vector<16x96xf32>
    %c0_6 = arith.constant 0 : index
    %c0_7 = arith.constant 0 : index
    %8 = vector.load %arg7[%c0_6, %c0_7] : memref<16x96xf32, #tpu.memory_space<vmem>>, vector<16x96xf32>
    tpu.vector_store %arg7[%c0_6, %c0_7], %7 {strides = array<i32>} : memref<16x96xf32, #tpu.memory_space<vmem>>, vector<16x96xf32>,
    %c0_i32_8 = arith.constant 0 : i32
    %9 = arith.cmpi eq, %arg2, %c0_i32_8 : i32
    %10 = arith.extui %9 : i1 to i32
    %c0_i32_9 = arith.constant 0 : i32
    %11 = arith.cmpi ne, %10, %c0_i32_9 : i32
    scf.if %11 {
      %c0_10 = arith.constant 0 : index
      %c0_11 = arith.constant 0 : index
      %12 = vector.load %arg7[%c0_10, %c0_11] : memref<16x96xf32, #tpu.memory_space<vmem>>, vector<16x96xf32>
      %c0_12 = arith.constant 0 : index
      %c0_13 = arith.constant 0 : index
      %13 = vector.load %arg5[%c0_12, %c0_13] : memref<1x96xf32, #tpu.memory_space<vmem>>, vector<1x96xf32>
      %14 = vector.broadcast %13 : vector<1x96xf32> to vector<16x96xf32>
      %15 = arith.addf %12, %14 : vector<16x96xf32>
      %16 = vector.extract_strided_slice %15 {offsets = [0, 0], sizes = [16, 8], strides = [1, 1]} : vector<16x96xf32> to vector<16x8xf32>
      %c0_14 = arith.constant 0 : index
      %c0_15 = arith.constant 0 : index
      %c0_16 = arith.constant 0 : index
      %17 = vector.load %arg6[%c0_14, %c0_15, %c0_16] : memref<12x16x8xf32, #tpu.memory_space<vmem>>, vector<1x16x8xf32>
      %18 = vector.shape_cast %17 : vector<1x16x8xf32> to vector<16x8xf32>
      %19 = vector.shape_cast %16 : vector<16x8xf32> to vector<1x16x8xf32>
      tpu.vector_store %arg6[%c0_14, %c0_15, %c0_16], %19 {strides = array<i32>} : memref<12x16x8xf32, #tpu.memory_space<vmem>>, vector<1x16x8xf32>,
      %20 = vector.extract_strided_slice %15 {offsets = [0, 8], sizes = [16, 8], strides = [1, 1]} : vector<16x96xf32> to vector<16x8xf32>
      %c1 = arith.constant 1 : index
      %c0_17 = arith.constant 0 : index
      %c0_18 = arith.constant 0 : index
      %21 = vector.load %arg6[%c1, %c0_17, %c0_18] : memref<12x16x8xf32, #tpu.memory_space<vmem>>, vector<1x16x8xf32>
      %22 = vector.shape_cast %21 : vector<1x16x8xf32> to vector<16x8xf32>
      %23 = vector.shape_cast %20 : vector<16x8xf32> to vector<1x16x8xf32>
      tpu.vector_store %arg6[%c1, %c0_17, %c0_18], %23 {strides = array<i32>} : memref<12x16x8xf32, #tpu.memory_space<vmem>>, vector<1x16x8xf32>,
      %24 = vector.extract_strided_slice %15 {offsets = [0, 16], sizes = [16, 8], strides = [1, 1]} : vector<16x96xf32> to vector<16x8xf32>
      %c2 = arith.constant 2 : index
      %c0_19 = arith.constant 0 : index
      %c0_20 = arith.constant 0 : index
      %25 = vector.load %arg6[%c2, %c0_19, %c0_20] : memref<12x16x8xf32, #tpu.memory_space<vmem>>, vector<1x16x8xf32>
      %26 = vector.shape_cast %25 : vector<1x16x8xf32> to vector<16x8xf32>
      %27 = vector.shape_cast %24 : vector<16x8xf32> to vector<1x16x8xf32>
      tpu.vector_store %arg6[%c2, %c0_19, %c0_20], %27 {strides = array<i32>} : memref<12x16x8xf32, #tpu.memory_space<vmem>>, vector<1x16x8xf32>,
      %28 = vector.extract_strided_slice %15 {offsets = [0, 24], sizes = [16, 8], strides = [1, 1]} : vector<16x96xf32> to vector<16x8xf32>
      %c3 = arith.constant 3 : index
      %c0_21 = arith.constant 0 : index
      %c0_22 = arith.constant 0 : index
      %29 = vector.load %arg6[%c3, %c0_21, %c0_22] : memref<12x16x8xf32, #tpu.memory_space<vmem>>, vector<1x16x8xf32>
      %30 = vector.shape_cast %29 : vector<1x16x8xf32> to vector<16x8xf32>
      %31 = vector.shape_cast %28 : vector<16x8xf32> to vector<1x16x8xf32>
      tpu.vector_store %arg6[%c3, %c0_21, %c0_22], %31 {strides = array<i32>} : memref<12x16x8xf32, #tpu.memory_space<vmem>>, vector<1x16x8xf32>,
      %32 = vector.extract_strided_slice %15 {offsets = [0, 32], sizes = [16, 8], strides = [1, 1]} : vector<16x96xf32> to vector<16x8xf32>
      %c4 = arith.constant 4 : index
      %c0_23 = arith.constant 0 : index
      %c0_24 = arith.constant 0 : index
      %33 = vector.load %arg6[%c4, %c0_23, %c0_24] : memref<12x16x8xf32, #tpu.memory_space<vmem>>, vector<1x16x8xf32>
      %34 = vector.shape_cast %33 : vector<1x16x8xf32> to vector<16x8xf32>
      %35 = vector.shape_cast %32 : vector<16x8xf32> to vector<1x16x8xf32>
      tpu.vector_store %arg6[%c4, %c0_23, %c0_24], %35 {strides = array<i32>} : memref<12x16x8xf32, #tpu.memory_space<vmem>>, vector<1x16x8xf32>,
      %36 = vector.extract_strided_slice %15 {offsets = [0, 40], sizes = [16, 8], strides = [1, 1]} : vector<16x96xf32> to vector<16x8xf32>
      %c5 = arith.constant 5 : index
      %c0_25 = arith.constant 0 : index
      %c0_26 = arith.constant 0 : index
      %37 = vector.load %arg6[%c5, %c0_25, %c0_26] : memref<12x16x8xf32, #tpu.memory_space<vmem>>, vector<1x16x8xf32>
      %38 = vector.shape_cast %37 : vector<1x16x8xf32> to vector<16x8xf32>
      %39 = vector.shape_cast %36 : vector<16x8xf32> to vector<1x16x8xf32>
      tpu.vector_store %arg6[%c5, %c0_25, %c0_26], %39 {strides = array<i32>} : memref<12x16x8xf32, #tpu.memory_space<vmem>>, vector<1x16x8xf32>,
      %40 = vector.extract_strided_slice %15 {offsets = [0, 48], sizes = [16, 8], strides = [1, 1]} : vector<16x96xf32> to vector<16x8xf32>
      %c6 = arith.constant 6 : index
      %c0_27 = arith.constant 0 : index
      %c0_28 = arith.constant 0 : index
      %41 = vector.load %arg6[%c6, %c0_27, %c0_28] : memref<12x16x8xf32, #tpu.memory_space<vmem>>, vector<1x16x8xf32>
      %42 = vector.shape_cast %41 : vector<1x16x8xf32> to vector<16x8xf32>
      %43 = vector.shape_cast %40 : vector<16x8xf32> to vector<1x16x8xf32>
      tpu.vector_store %arg6[%c6, %c0_27, %c0_28], %43 {strides = array<i32>} : memref<12x16x8xf32, #tpu.memory_space<vmem>>, vector<1x16x8xf32>,
      %44 = vector.extract_strided_slice %15 {offsets = [0, 56], sizes = [16, 8], strides = [1, 1]} : vector<16x96xf32> to vector<16x8xf32>
      %c7 = arith.constant 7 : index
      %c0_29 = arith.constant 0 : index
      %c0_30 = arith.constant 0 : index
      %45 = vector.load %arg6[%c7, %c0_29, %c0_30] : memref<12x16x8xf32, #tpu.memory_space<vmem>>, vector<1x16x8xf32>
      %46 = vector.shape_cast %45 : vector<1x16x8xf32> to vector<16x8xf32>
      %47 = vector.shape_cast %44 : vector<16x8xf32> to vector<1x16x8xf32>
      tpu.vector_store %arg6[%c7, %c0_29, %c0_30], %47 {strides = array<i32>} : memref<12x16x8xf32, #tpu.memory_space<vmem>>, vector<1x16x8xf32>,
      %48 = vector.extract_strided_slice %15 {offsets = [0, 64], sizes = [16, 8], strides = [1, 1]} : vector<16x96xf32> to vector<16x8xf32>
      %c8 = arith.constant 8 : index
      %c0_31 = arith.constant 0 : index
      %c0_32 = arith.constant 0 : index
      %49 = vector.load %arg6[%c8, %c0_31, %c0_32] : memref<12x16x8xf32, #tpu.memory_space<vmem>>, vector<1x16x8xf32>
      %50 = vector.shape_cast %49 : vector<1x16x8xf32> to vector<16x8xf32>
      %51 = vector.shape_cast %48 : vector<16x8xf32> to vector<1x16x8xf32>
      tpu.vector_store %arg6[%c8, %c0_31, %c0_32], %51 {strides = array<i32>} : memref<12x16x8xf32, #tpu.memory_space<vmem>>, vector<1x16x8xf32>,
      %52 = vector.extract_strided_slice %15 {offsets = [0, 72], sizes = [16, 8], strides = [1, 1]} : vector<16x96xf32> to vector<16x8xf32>
      %c9 = arith.constant 9 : index
      %c0_33 = arith.constant 0 : index
      %c0_34 = arith.constant 0 : index
      %53 = vector.load %arg6[%c9, %c0_33, %c0_34] : memref<12x16x8xf32, #tpu.memory_space<vmem>>, vector<1x16x8xf32>
      %54 = vector.shape_cast %53 : vector<1x16x8xf32> to vector<16x8xf32>
      %55 = vector.shape_cast %52 : vector<16x8xf32> to vector<1x16x8xf32>
      tpu.vector_store %arg6[%c9, %c0_33, %c0_34], %55 {strides = array<i32>} : memref<12x16x8xf32, #tpu.memory_space<vmem>>, vector<1x16x8xf32>,
      %56 = vector.extract_strided_slice %15 {offsets = [0, 80], sizes = [16, 8], strides = [1, 1]} : vector<16x96xf32> to vector<16x8xf32>
      %c10 = arith.constant 10 : index
      %c0_35 = arith.constant 0 : index
      %c0_36 = arith.constant 0 : index
      %57 = vector.load %arg6[%c10, %c0_35, %c0_36] : memref<12x16x8xf32, #tpu.memory_space<vmem>>, vector<1x16x8xf32>
      %58 = vector.shape_cast %57 : vector<1x16x8xf32> to vector<16x8xf32>
      %59 = vector.shape_cast %56 : vector<16x8xf32> to vector<1x16x8xf32>
      tpu.vector_store %arg6[%c10, %c0_35, %c0_36], %59 {strides = array<i32>} : memref<12x16x8xf32, #tpu.memory_space<vmem>>, vector<1x16x8xf32>,
      %60 = vector.extract_strided_slice %15 {offsets = [0, 88], sizes = [16, 8], strides = [1, 1]} : vector<16x96xf32> to vector<16x8xf32>
      %c11 = arith.constant 11 : index
      %c0_37 = arith.constant 0 : index
      %c0_38 = arith.constant 0 : index
      %61 = vector.load %arg6[%c11, %c0_37, %c0_38] : memref<12x16x8xf32, #tpu.memory_space<vmem>>, vector<1x16x8xf32>
      %62 = vector.shape_cast %61 : vector<1x16x8xf32> to vector<16x8xf32>
      %63 = vector.shape_cast %60 : vector<16x8xf32> to vector<1x16x8xf32>
      tpu.vector_store %arg6[%c11, %c0_37, %c0_38], %63 {strides = array<i32>} : memref<12x16x8xf32, #tpu.memory_space<vmem>>, vector<1x16x8xf32>,
    } else {
    }
    return
  }
  func.func @transform_0(%arg0: i32, %arg1: i32, %arg2: i32) -> (i32, i32) {
    %c0_i32 = arith.constant 0 : i32
    return %arg0, %arg2 : i32, i32
  }
  func.func @transform_1(%arg0: i32, %arg1: i32, %arg2: i32) -> (i32, i32) {
    %c0_i32 = arith.constant 0 : i32
    return %arg2, %arg1 : i32, i32
  }
  func.func @transform_2(%arg0: i32, %arg1: i32, %arg2: i32) -> (i32, i32) {
    %c0_i32 = arith.constant 0 : i32
    %c0_i32_0 = arith.constant 0 : i32
    return %c0_i32, %arg1 : i32, i32
  }
  func.func @transform_3(%arg0: i32, %arg1: i32, %arg2: i32) -> (i32, i32, i32) {
    %c0_i32 = arith.constant 0 : i32
    %c0_i32_0 = arith.constant 0 : i32
    return %arg1, %arg0, %c0_i32 : i32, i32, i32
  }
}

</mosaic_0001>

<bundles_post_ra>
// kernel: tpu_custom_call.1
= control target key start
LH: loop header
LB: loop body
LE: loop exit
PB: predicated region body
PF: predicated region fallthrough
CT: control target
= control target key end

     0   :  { %8 = vsyncpa [#allocation4], 0  ;;  %s545_s0 = inlined_call_operand.hbm [shape: f32[16,32], index: 0, kind: input, shape index: {}]   ;;  %s546_s1 = inlined_call_operand.hbm [shape: f32[32,96], index: 1, kind: input, shape index: {}]   ;;  %s547_s2 = inlined_call_operand.vmem [shape: f32[1,96], index: 2, kind: input, shape index: {}]   ;;  %s548_s3 = inlined_call_operand.vmem [shape: f32[12,16,8], index: 3, kind: output, shape index: {}]  }
   0x1   :  { %9 = vsyncpa [#allocation6], 0  ;;  %s382_s12 = smov [#allocation3]   ;;  %s334_s16 = scalar_lea.hbm %s545_s0, 256 }
   0x2   :  { %s15_s13 = sshll.u32 %s382_s12, 4  ;;  %p335_p0 = scmp.ne.s32.totalorder %s545_s0, %s334_s16  ;;  %s16_s13 = int_to_ptr.vmem [resolvable:$true] %s15_s13 }
   0x3   :  { %p338_p1 = scmp.lt.u32.totalorder %s334_s16, %s545_s0 }
   0x5   :  { %p340_p2 = pnand %p338_p1, %p335_p0 }
   0x7   :  { %343 = shalt.err (!%p340_p2)
}
   0x8   :  { %s344_s21 = scalar_lea.vmem %s16_s13, 256  ;;  %p349_p4 = scmp.lt.s32.totalorder %s16_s13, %s16_s13 }
   0x9   :  { %p345_p3 = scmp.ne.s32.totalorder %s16_s13, %s344_s21  ;;  %p350_p5 = scmp.lt.s32.totalorder %s344_s21, %s344_s21 }
   0xb   :  { %p351_p6 = por %p350_p5, %p349_p4 }
   0xd   :  { %p352_p7 = pnand %p351_p6, %p345_p3 }
   0xf   :  { %355 = shalt.err (!%p352_p7)
}
  0x10   :  { %s383_s22 = smov 128   ;;  %s384_s23 = smov 8  }
  0x11   :  { %21 = dma.hbm_to_vmem [thread:$0]  %s545_s0, 256, %s16_s13, [#allocation4], %s383_s22, %s383_s22, %s384_s23  }
  0x12   :  { %s385_s26 = smov [#allocation5]   ;;  %s356_s30 = scalar_lea.hbm %s546_s1, 512 }
  0x13   :  { %s27_s27 = sshll.u32 %s385_s26, 4  ;;  %p357_p8 = scmp.ne.s32.totalorder %s546_s1, %s356_s30  ;;  %s28_s27 = int_to_ptr.vmem [resolvable:$true] %s27_s27 }
  0x14   :  { %p360_p9 = scmp.lt.u32.totalorder %s356_s30, %s546_s1 }
  0x16   :  { %p362_p10 = pnand %p360_p9, %p357_p8 }
  0x18   :  { %365 = shalt.err (!%p362_p10)
}
  0x19   :  { %s366_s8 = scalar_lea.vmem %s28_s27, 512  ;;  %p371_p12 = scmp.lt.s32.totalorder %s28_s27, %s28_s27 }
  0x1a   :  { %p367_p11 = scmp.ne.s32.totalorder %s28_s27, %s366_s8  ;;  %p372_p13 = scmp.lt.s32.totalorder %s366_s8, %s366_s8 }
  0x1c   :  { %p373_p0 = por %p372_p13, %p371_p12 }
  0x1e   :  { %p374_p1 = pnand %p373_p0, %p367_p11 }
  0x20   :  { %377 = shalt.err (!%p374_p1)
}
  0x21   :  { %33 = dma.hbm_to_vmem [thread:$0]  %s546_s1, 512, %s28_s27, [#allocation6], %s383_s22, %s383_s22, %s384_s23  }
  0x22   :  { %378 = dma.done.wait [#allocation4], 256  }
  0x23   :  { %379 = vsyncadd [#allocation4], 4294967040 }
  0x24   :  { %380 = dma.done.wait [#allocation6], 512  }
  0x25   :  { %381 = vsyncadd [#allocation6], 4294966784  ;;  %vm46_vm0 = vcmask 785408   ;;  %v386_v0 = vmov 0.0   ;;  %vm57_vm1 = vcmask 261120   ;;  %v53_v1 = vld [vmem:[#allocation5] sm:$0xff] }
  0x26   :  { %48 = vst.msk [vmem:[#allocation2 + $0x8] sm:$0xff] %vm46_vm0, %v386_v0  ;;  %47 = vst.msk [vmem:[#allocation2] sm:$0xff] %vm46_vm0, %v386_v0  ;;  %v54_v2 = vld [vmem:[#allocation5 + $0x8] sm:$0xff]  ;;  %v55_v3 = vld [vmem:[#allocation5 + $0x10] sm:$0xff]  ;;  %vm158_vm2 = vcmask 64512   ;;  %s387_s13 = smov 112  }
  0x27   :  { %v310_v4 = vpack.c.bf16 %v54_v2, %v53_v1  ;;  %v56_v5 = vld [vmem:[#allocation5 + $0x18] sm:$0xff]  ;;  %v51_v6 = vld [vmem:[#allocation3] sm:$0xff]  ;;  %v270_v15 = vld [vmem:[%s547_s2] ss:$0 sm:$0xff]  ;;  %s388_s14 = smov 120   ;;  %s389_s2 = smov 104  }
  0x28   :  { %v314_v7 = vpack.c.bf16 %v56_v5, %v55_v3  ;;  %307 = vmatprep.mubr.msk.f32.mxu0 %vm57_vm1, %v51_v6  ;;  %v52_v8 = vld [vmem:[#allocation3 + $0x8] sm:$0xff]  ;;  %s390_s17 = smov 96   ;;  %s391_s18 = smov 88  }
  0x29   :  { %311 = vmatprep.subr.bf16.mxu0 %v310_v4  ;;  %s392_s19 = smov 80   ;;  %s393_s20 = smov 72  }
  0x2a   :  { %313 = vmatpush3.bf16.msra.mxu0 %v310_v4  ;;  %s394_s21 = smov 64   ;;  %s395_s22 = smov 56  }
  0x2b   :  { %315 = vmatprep.subr.bf16.mxu0 %v314_v7  ;;  %s396_s23 = smov 48   ;;  %s397_s24 = smov 40  }
  0x2d   :  { %v50_v9 = vld [vmem:[#allocation2 + $0x8] sm:$0xff]  ;;  %v49_v10 = vld [vmem:[#allocation2] sm:$0xff] }
  0x2e   :  { %317 = vmatpush3.bf16.msra.mxu0 %v314_v7 }
  0x31   :  { %308 = vmatmul.mubr.msk.f32.vlgmr.msra.gmra.mrb[0].mxu0 %vm57_vm1, %v52_v8 }
 0x104   :  { %v309_v11 = vpop.f32.mrb[0].mxu0 }
 0x105   :  { %v140_v12 = vadd.f32 %v309_v11, %v50_v9  ;;  %v130_v13 = vpop.f32.mrb[1].mxu0 }
 0x106   :  { %v139_v14 = vadd.f32 %v130_v13, %v49_v10 }
 0x107   :  { %143 = vst.msk [vmem:[#allocation2 + $0x8] sm:$0xff] %vm46_vm0, %v140_v12 }
 0x108   :  { %142 = vst.msk [vmem:[#allocation2] sm:$0xff] %vm46_vm0, %v139_v14 }
 0x10e   :  { %v148_v16 = vld [vmem:[#allocation2 + $0x8] sm:$0xff] }
 0x10f   :  { %v157_v17 = vadd.f32 %v270_v15, %v148_v16  ;;  %v147_v18 = vld [vmem:[#allocation2] sm:$0xff] }
 0x110   :  { %v156_v19 = vadd.f32 %v270_v15, %v147_v18 }
 0x111   :  { %160 = vst.msk [vmem:[%s548_s3 + $0x8] sm:$0xff] %vm158_vm2, %v157_v17  ;;  %174 = vrot.lane.b32.xlu1 %v157_v17, %s387_s13  ;;  %165 = vrot.lane.b32.xlu0 %v157_v17, %s388_s14 }
 0x112   :  { %159 = vst.msk [vmem:[%s548_s3] sm:$0xff] %vm158_vm2, %v156_v19 }
 0x115   :  { %183 = vrot.lane.b32.xlu1 %v157_v17, %s389_s2  ;;  %163 = vrot.lane.b32.xlu0 %v156_v19, %s388_s14 }
 0x119   :  { %192 = vrot.lane.b32.xlu1 %v157_v17, %s390_s17  ;;  %181 = vrot.lane.b32.xlu0 %v156_v19, %s389_s2 }
 0x11d   :  { %201 = vrot.lane.b32.xlu1 %v157_v17, %s391_s18  ;;  %190 = vrot.lane.b32.xlu0 %v156_v19, %s390_s17 }
 0x121   :  { %210 = vrot.lane.b32.xlu1 %v157_v17, %s392_s19  ;;  %199 = vrot.lane.b32.xlu0 %v156_v19, %s391_s18 }
 0x125   :  { %219 = vrot.lane.b32.xlu1 %v157_v17, %s393_s20  ;;  %208 = vrot.lane.b32.xlu0 %v156_v19, %s392_s19 }
 0x129   :  { %228 = vrot.lane.b32.xlu1 %v157_v17, %s394_s21  ;;  %217 = vrot.lane.b32.xlu0 %v156_v19, %s393_s20 }
 0x12d   :  { %237 = vrot.lane.b32.xlu1 %v157_v17, %s395_s22  ;;  %226 = vrot.lane.b32.xlu0 %v156_v19, %s394_s21 }
 0x131   :  { %246 = vrot.lane.b32.xlu1 %v157_v17, %s396_s23  ;;  %235 = vrot.lane.b32.xlu0 %v156_v19, %s395_s22 }
 0x135   :  { %172 = vrot.lane.b32.xlu1 %v156_v19, %s387_s13  ;;  %244 = vrot.lane.b32.xlu0 %v156_v19, %s396_s23 }
 0x139   :  { %255 = vrot.lane.b32.xlu1 %v157_v17, %s397_s24  ;;  %253 = vrot.lane.b32.xlu0 %v156_v19, %s397_s24 }
 0x183   :  { %v175_v20 = vpop.permute.xlu1 %174  ;;  %v166_v21 = vpop.permute.xlu0 %165 }
 0x184   :  { %274 = vst.msk [vmem:[%s548_s3 + $0x28] sm:$0xff] %vm158_vm2, %v175_v20  ;;  %272 = vst.msk [vmem:[%s548_s3 + $0x18] sm:$0xff] %vm158_vm2, %v166_v21 }
 0x187   :  { %v184_v22 = vpop.permute.xlu1 %183  ;;  %v164_v23 = vpop.permute.xlu0 %163 }
 0x188   :  { %276 = vst.msk [vmem:[%s548_s3 + $0x38] sm:$0xff] %vm158_vm2, %v184_v22  ;;  %271 = vst.msk [vmem:[%s548_s3 + $0x10] sm:$0xff] %vm158_vm2, %v164_v23 }
 0x18b   :  { %v193_v24 = vpop.permute.xlu1 %192  ;;  %v182_v25 = vpop.permute.xlu0 %181 }
 0x18c   :  { %278 = vst.msk [vmem:[%s548_s3 + $0x48] sm:$0xff] %vm158_vm2, %v193_v24  ;;  %275 = vst.msk [vmem:[%s548_s3 + $0x30] sm:$0xff] %vm158_vm2, %v182_v25 }
 0x18f   :  { %v202_v26 = vpop.permute.xlu1 %201  ;;  %v191_v27 = vpop.permute.xlu0 %190 }
 0x190   :  { %280 = vst.msk [vmem:[%s548_s3 + $0x58] sm:$0xff] %vm158_vm2, %v202_v26  ;;  %277 = vst.msk [vmem:[%s548_s3 + $0x40] sm:$0xff] %vm158_vm2, %v191_v27 }
 0x193   :  { %v211_v28 = vpop.permute.xlu1 %210  ;;  %v200_v29 = vpop.permute.xlu0 %199 }
 0x194   :  { %282 = vst.msk [vmem:[%s548_s3 + $0x68] sm:$0xff] %vm158_vm2, %v211_v28  ;;  %279 = vst.msk [vmem:[%s548_s3 + $0x50] sm:$0xff] %vm158_vm2, %v200_v29 }
 0x197   :  { %v220_v30 = vpop.permute.xlu1 %219  ;;  %v209_v31 = vpop.permute.xlu0 %208 }
 0x198   :  { %284 = vst.msk [vmem:[%s548_s3 + $0x78] sm:$0xff] %vm158_vm2, %v220_v30  ;;  %281 = vst.msk [vmem:[%s548_s3 + $0x60] sm:$0xff] %vm158_vm2, %v209_v31 }
 0x19b   :  { %v229_v32 = vpop.permute.xlu1 %228  ;;  %v218_v33 = vpop.permute.xlu0 %217 }
 0x19c   :  { %286 = vst.msk [vmem:[%s548_s3 + $0x88] sm:$0xff] %vm158_vm2, %v229_v32  ;;  %283 = vst.msk [vmem:[%s548_s3 + $0x70] sm:$0xff] %vm158_vm2, %v218_v33 }
 0x19f   :  { %v238_v34 = vpop.permute.xlu1 %237  ;;  %v227_v35 = vpop.permute.xlu0 %226 }
 0x1a0   :  { %288 = vst.msk [vmem:[%s548_s3 + $0x98] sm:$0xff] %vm158_vm2, %v238_v34  ;;  %285 = vst.msk [vmem:[%s548_s3 + $0x80] sm:$0xff] %vm158_vm2, %v227_v35 }
 0x1a3   :  { %v247_v36 = vpop.permute.xlu1 %246  ;;  %v236_v37 = vpop.permute.xlu0 %235 }
 0x1a4   :  { %290 = vst.msk [vmem:[%s548_s3 + $0xa8] sm:$0xff] %vm158_vm2, %v247_v36  ;;  %287 = vst.msk [vmem:[%s548_s3 + $0x90] sm:$0xff] %vm158_vm2, %v236_v37 }
 0x1a7   :  { %v173_v38 = vpop.permute.xlu1 %172  ;;  %v245_v39 = vpop.permute.xlu0 %244 }
 0x1a8   :  { %273 = vst.msk [vmem:[%s548_s3 + $0x20] sm:$0xff] %vm158_vm2, %v173_v38  ;;  %289 = vst.msk [vmem:[%s548_s3 + $0xa0] sm:$0xff] %vm158_vm2, %v245_v39 }
 0x1ab   :  { %v256_v40 = vpop.permute.xlu1 %255  ;;  %v254_v41 = vpop.permute.xlu0 %253 }
 0x1ac   :  { %292 = vst.msk [vmem:[%s548_s3 + $0xb8] sm:$0xff] %vm158_vm2, %v256_v40  ;;  %291 = vst.msk [vmem:[%s548_s3 + $0xb0] sm:$0xff] %vm158_vm2, %v254_v41 }
 0x1ad   :  { %266 = vsyncpa [#allocation4], 1 }
 0x1ae   :  { %267 = vsyncpa [#allocation6], 1 }

</bundles_post_ra>
